<compile_context>
chip_gen: v5e
topology: v5e:2x2
jax: 0.10.0
libtpu: 0.0.40
codegen_flags: <defaults>
</compile_context>

<pallas_src>
import functools

import jax
import jax.numpy as jnp
from jax.experimental import pallas as pl
from jax.experimental.pallas import tpu as pltpu


def _head_kernel(x_ref, w_ref, b_ref, o_ref):
    # [tr, P*din] @ [P*din, P*dout] with f32 accumulation on the MXU, + bias.
    acc = jnp.dot(x_ref[...], w_ref[...], preferred_element_type=jnp.float32)
    o_ref[...] = (acc + b_ref[...]).astype(o_ref.dtype)


def _round_up(a, m):
    return ((a + m - 1) // m) * m


def _packing_factor(dim_out, lane=128):
    """Smallest row-packing factor P so the packed output width P*dim_out
    fills whole 128-lane vreg rows (lane-dense, unmasked stores)."""
    if dim_out >= lane:
        return 1
    p = (lane + dim_out - 1) // dim_out          # ceil(128 / dim_out)
    for q in range(p, 2 * p + 1):                # prefer an exact vreg multiple
        if (q * dim_out) % lane == 0:
            return q
    return p


@functools.partial(jax.jit, static_argnames=("tr", "compute_dtype"))
def gnn_inductive_node_head(x, params, *, tr=2048, compute_dtype=jnp.float32):
    """Apply the 3-layer Linear head to node features x: [N, dim_in]."""
    w1, b1, w2, b2, w3, b3 = params
    n, dim_in = x.shape
    dim_out = w3.shape[1]

    # ---- 1. Fuse the three activation-free Linears into one affine map
    #          (tiny matmuls, done once per call in plain XLA).
    w23 = jnp.dot(w2, w3)
    w_fused = jnp.dot(w1, w23)                             # [dim_in, dim_out]
    b_fused = jnp.dot(b1, w23) + jnp.dot(b2, w3) + b3      # [1, dim_out]

    # ---- 2. Lane-dense packing: P original rows per packed row.
    p = _packing_factor(dim_out)                           # 16 for dim_out=8
    din_p, dout_p = p * dim_in, p * dim_out                # 512, 128 here

    # Block-diagonal fused weight (P copies of W_fused on the diagonal) and
    # tiled bias, built once in XLA.
    eye_p = jnp.eye(p, dtype=w_fused.dtype)
    w_bd = jnp.einsum("pq,ab->paqb", eye_p, w_fused).reshape(din_p, dout_p)
    b_tiled = jnp.tile(b_fused, (1, p)).astype(jnp.float32)  # [1, P*dim_out]

    # ---- 3. Row tiling over packed rows: big tile to amortize per-step
    #          overhead, rounded to the 8-sublane granule, and capped so the
    #          grid keeps >= 2 steps when there is enough work (v7x: 2 TCs).
    n_packed = -(-n // p)
    tr_eff = max(8, min(tr, _round_up(n_packed, 8)))
    if _round_up(n_packed, 8) >= 16:
        tr_eff = min(tr_eff, _round_up(-(-n_packed // 2), 8))
    n_packed_pad = _round_up(n_packed, tr_eff)
    n_rows_pad = n_packed_pad * p

    # Zero-pad rows (padded rows get bias-only values, sliced off below) and
    # do the free row-major reshape to the packed layout.
    x_pad = jnp.pad(x, ((0, n_rows_pad - n), (0, 0))) if n_rows_pad != n else x
    x_packed = x_pad.reshape(n_packed_pad, din_p)

    # Optional bandwidth win: stream x / W in bf16, accumulate in f32.
    x_packed = x_packed.astype(compute_dtype)
    w_bd = w_bd.astype(compute_dtype)

    grid = (n_packed_pad // tr_eff,)
    resident = lambda i: (0, 0)    # weight / bias stay resident across the grid

    flops = 2 * n_packed_pad * din_p * dout_p
    bytes_accessed = (x_packed.size * x_packed.dtype.itemsize
                      + w_bd.size * w_bd.dtype.itemsize
                      + b_tiled.size * 4
                      + n_packed_pad * dout_p * x.dtype.itemsize)

    out_packed = pl.pallas_call(
        _head_kernel,
        out_shape=jax.ShapeDtypeStruct((n_packed_pad, dout_p), x.dtype),
        grid=grid,
        in_specs=[
            pl.BlockSpec((tr_eff, din_p), lambda i: (i, 0)),   # streamed x tile
            pl.BlockSpec((din_p, dout_p), resident),           # block-diag W
            pl.BlockSpec((1, dout_p), resident),               # tiled bias
        ],
        out_specs=pl.BlockSpec((tr_eff, dout_p), lambda i: (i, 0)),
        compiler_params=pltpu.CompilerParams(
            dimension_semantics=("parallel",),
            vmem_limit_bytes=32 * 1024 * 1024,   # safe on v5e/v6e/v7x
        ),
        cost_estimate=pl.CostEstimate(
            flops=flops, transcendentals=0, bytes_accessed=bytes_accessed),
    )(x_packed, w_bd, b_tiled)

    # Free reshape back to [rows, dim_out] and drop padded rows.
    out = out_packed.reshape(n_rows_pad, dim_out)
    return out[:n] if n_rows_pad != n else out


def init_params(key, dim_in, dim_out):
    """Deterministic synthetic parameters (3 Linear layers with bias)."""
    k1, k2, k3, k4, k5, k6 = jax.random.split(key, 6)
    scale_in = 1.0 / jnp.sqrt(jnp.float32(dim_in))
    w1 = jax.random.normal(k1, (dim_in, dim_in), jnp.float32) * scale_in
    b1 = jax.random.normal(k2, (1, dim_in), jnp.float32) * scale_in
    w2 = jax.random.normal(k3, (dim_in, dim_in), jnp.float32) * scale_in
    b2 = jax.random.normal(k4, (1, dim_in), jnp.float32) * scale_in
    w3 = jax.random.normal(k5, (dim_in, dim_out), jnp.float32) * scale_in
    b3 = jax.random.normal(k6, (1, dim_out), jnp.float32) * scale_in
    return (w1, b1, w2, b2, w3, b3)


def reference(x, params):
    """Unfused reference: exactly the PyTorch module's 3 sequential Linears."""
    w1, b1, w2, b2, w3, b3 = params
    h = x @ w1 + b1
    h = h @ w2 + b2
    return h @ w3 + b3


if __name__ == "__main__":
    # Module-consistent small shapes: 1000 region nodes (exercises the
    # non-divisible padding + packing path), dim_in=32, dim_out=8.
    num_nodes, dim_in, dim_out = 1000, 32, 8

    key = jax.random.PRNGKey(0)
    kx, kp = jax.random.split(key)
    x = jax.random.normal(kx, (num_nodes, dim_in), jnp.float32)
    params = init_params(kp, dim_in, dim_out)

    ref = reference(x, params)

    # f32 path: bit-accurate within tight tolerance.
    out = jax.block_until_ready(gnn_inductive_node_head(x, params))
    assert out.shape == (num_nodes, dim_out)
    assert jnp.allclose(out, ref, atol=1e-4, rtol=1e-4)

    # bf16 streaming path (HBM-bandwidth win; f32 accumulation on the MXU).
    out_bf16 = jax.block_until_ready(
        gnn_inductive_node_head(x, params, compute_dtype=jnp.bfloat16))
    assert out_bf16.shape == (num_nodes, dim_out)
    assert jnp.allclose(out_bf16, ref, atol=5e-2, rtol=5e-2)

    print("KERNEL_OK")
</pallas_src>

<mosaic_0001>
module attributes {stable_mosaic.version = 11 : i64} {
  func.func @_head_kernel(%arg0: i32, %arg1: memref<32x512xf32, #tpu.memory_space<vmem>>, %arg2: memref<512x128xf32, #tpu.memory_space<vmem>>, %arg3: memref<1x128xf32, #tpu.memory_space<vmem>>, %arg4: memref<32x128xf32, #tpu.memory_space<vmem>>) attributes {dimension_semantics = [#tpu.dimension_semantics<parallel>], iteration_bounds = array<i64: 2>, scalar_prefetch = 0 : i64, scratch_operands = 0 : i64, tpu.core_type = #tpu.core_type<tc>, window_params = [{transform_indices = @transform_0, window_bounds = array<i64: 32, 512>}, {pipeline_mode = #tpu.pipeline_mode<synchronous>, transform_indices = @transform_1, window_bounds = array<i64: 512, 128>}, {pipeline_mode = #tpu.pipeline_mode<synchronous>, transform_indices = @transform_2, window_bounds = array<i64: 1, 128>}, {transform_indices = @transform_3, window_bounds = array<i64: 32, 128>}]} {
    %c0 = arith.constant 0 : index
    %c0_0 = arith.constant 0 : index
    %0 = vector.load %arg1[%c0, %c0_0] : memref<32x512xf32, #tpu.memory_space<vmem>>, vector<32x512xf32>
    %c0_1 = arith.constant 0 : index
    %c0_2 = arith.constant 0 : index
    %1 = vector.load %arg2[%c0_1, %c0_2] : memref<512x128xf32, #tpu.memory_space<vmem>>, vector<512x128xf32>
    %cst = arith.constant dense<0.000000e+00> : vector<32x128xf32>
    %2 = tpu.matmul %0, %1, %cst {dimension_numbers = #tpu.dot_dimension_numbers<[1], [0], [0], [1], [0, 0, 1, 1], [], []>} : vector<32x512xf32>, vector<512x128xf32>, vector<32x128xf32> -> vector<32x128xf32>
    %c0_3 = arith.constant 0 : index
    %c0_4 = arith.constant 0 : index
    %3 = vector.load %arg3[%c0_3, %c0_4] : memref<1x128xf32, #tpu.memory_space<vmem>>, vector<1x128xf32>
    %4 = vector.broadcast %3 : vector<1x128xf32> to vector<32x128xf32>
    %5 = arith.addf %2, %4 : vector<32x128xf32>
    %c0_5 = arith.constant 0 : index
    %c0_6 = arith.constant 0 : index
    %6 = vector.load %arg4[%c0_5, %c0_6] : memref<32x128xf32, #tpu.memory_space<vmem>>, vector<32x128xf32>
    tpu.vector_store %arg4[%c0_5, %c0_6], %5 {strides = array<i32>} : memref<32x128xf32, #tpu.memory_space<vmem>>, vector<32x128xf32>,
    return
  }
  func.func @transform_0(%arg0: i32) -> (i32, i32) {
    %c0_i32 = arith.constant 0 : i32
    %c0_i32_0 = arith.constant 0 : i32
    return %arg0, %c0_i32 : i32, i32
  }
  func.func @transform_1(%arg0: i32) -> (i32, i32) {
    %c0_i32 = arith.constant 0 : i32
    %c0_i32_0 = arith.constant 0 : i32
    %c0_i32_1 = arith.constant 0 : i32
    return %c0_i32, %c0_i32_0 : i32, i32
  }
  func.func @transform_2(%arg0: i32) -> (i32, i32) {
    %c0_i32 = arith.constant 0 : i32
    %c0_i32_0 = arith.constant 0 : i32
    %c0_i32_1 = arith.constant 0 : i32
    return %c0_i32, %c0_i32_0 : i32, i32
  }
  func.func @transform_3(%arg0: i32) -> (i32, i32) {
    %c0_i32 = arith.constant 0 : i32
    %c0_i32_0 = arith.constant 0 : i32
    return %arg0, %c0_i32 : i32, i32
  }
}

</mosaic_0001>

<bundles_post_ra>
// kernel: gnn_inductive_node_head.1
= control target key start
LH: loop header
LB: loop body
LE: loop exit
PB: predicated region body
PF: predicated region fallthrough
CT: control target
= control target key end

     0   :  { %s487_s12 = smov 0   ;;  %s729_s0 = inlined_call_operand.vmem [shape: f32[64,512], index: 0, kind: input, shape index: {}]   ;;  %s730_s1 = inlined_call_operand.vmem [shape: f32[512,128], index: 1, kind: input, shape index: {}]   ;;  %s731_s2 = inlined_call_operand.vmem [shape: f32[1,128], index: 2, kind: input, shape index: {}]   ;;  %s732_s3 = inlined_call_operand.vmem [shape: f32[64,128], index: 3, kind: output, shape index: {}]  }
   0x1 LB: > { %s437_s13 = sadd.s32 4294967295, %s465_s12   ;;  %p441_p0 = scmp.ge.s32.totalorder %s465_s12, 1  ;;  %s465_s12 = sphi %s487_s12, %s13_s12  }
   0x2   : > { %p139_p1 = scmp.lt.s32.totalorder %s465_s12, 3 }
   0x4   : > { %p140_p2 = pnand %p441_p0, %p139_p1 }
   0x5   : > { %s587_s24 = sshll.u32 (!%p140_p2), %s437_s13, 2 }
   0x6   : > { %143 = sbr.rel (%p140_p2) target bundleno = 205 (0xcd), region = 32  ;;  %p165_p3 = scmp.lt.s32.totalorder (!%p140_p2), %s587_s24, 7 }
   0xb   : > { %v240_v0 = vld [vmem:[%s730_s1 + $0x178] sm:$0xff]  ;;  %v239_v2 = vld [vmem:[%s730_s1 + $0x170] sm:$0xff]  ;;  %v238_v6 = vld [vmem:[%s730_s1 + $0x168] sm:$0xff]  ;;  %s734_s24 = smov (!%p165_p3, %s587_s24), 7 }
   0xc   : > { %v208_v1 = vld [vmem:[%s730_s1 + $0x78] sm:$0xff]  ;;  %319 = vmatpush.msra.mxu2 %v240_v0  ;;  %v207_v4 = vld [vmem:[%s730_s1 + $0x70] sm:$0xff]  ;;  %v206_v8 = vld [vmem:[%s730_s1 + $0x68] sm:$0xff]  ;;  %s449_s18 = sshll.u32 %s734_s24, 5  ;;  %s446_s23 = sshll.u32 %s734_s24, 3 }
   0xd   : > { %261 = vmatpush.msra.mxu0 %v208_v1  ;;  %v256_v3 = vld [vmem:[%s730_s1 + $0x1f8] sm:$0xff]  ;;  %v255_v7 = vld [vmem:[%s730_s1 + $0x1f0] sm:$0xff]  ;;  %v254_v10 = vld [vmem:[%s730_s1 + $0x1e8] sm:$0xff]  ;;  %s683_s6 = scalar_lea.vmem %s729_s0, %s449_s18  ;;  %s175_s27 = scalar_lea.vmem %s732_s3, %s446_s23 }
   0xe   : > { %v224_v5 = vld [vmem:[%s730_s1 + $0xf8] sm:$0xff]  ;;  %348 = vmatpush.msra.mxu3 %v256_v3  ;;  %320 = vmatpush.msra.mxu2 %v239_v2  ;;  %v223_v9 = vld [vmem:[%s730_s1 + $0xf0] sm:$0xff]  ;;  %v237_v11 = vld [vmem:[%s730_s1 + $0x160] sm:$0xff] }
   0xf   : > { %290 = vmatpush.msra.mxu1 %v224_v5  ;;  %262 = vmatpush.msra.mxu0 %v207_v4  ;;  %v205_v12 = vld [vmem:[%s730_s1 + $0x60] sm:$0xff]  ;;  %v222_v13 = vld [vmem:[%s730_s1 + $0xe8] sm:$0xff]  ;;  %v236_v16 = vld [vmem:[%s730_s1 + $0x158] sm:$0xff] }
  0x10   : > { %349 = vmatpush.msra.mxu3 %v255_v7  ;;  %321 = vmatpush.msra.mxu2 %v238_v6  ;;  %v253_v14 = vld [vmem:[%s730_s1 + $0x1e0] sm:$0xff]  ;;  %v204_v17 = vld [vmem:[%s730_s1 + $0x58] sm:$0xff]  ;;  %v235_v20 = vld [vmem:[%s730_s1 + $0x150] sm:$0xff] }
  0x11   : > { %291 = vmatpush.msra.mxu1 %v223_v9  ;;  %263 = vmatpush.msra.mxu0 %v206_v8  ;;  %v221_v15 = vld [vmem:[%s730_s1 + $0xe0] sm:$0xff]  ;;  %v252_v18 = vld [vmem:[%s730_s1 + $0x1d8] sm:$0xff]  ;;  %v203_v21 = vld [vmem:[%s730_s1 + $0x50] sm:$0xff] }
  0x12   : > { %350 = vmatpush.msra.mxu3 %v254_v10  ;;  %322 = vmatpush.msra.mxu2 %v237_v11  ;;  %v220_v19 = vld [vmem:[%s730_s1 + $0xd8] sm:$0xff]  ;;  %v251_v22 = vld [vmem:[%s730_s1 + $0x1d0] sm:$0xff]  ;;  %v234_v24 = vld [vmem:[%s730_s1 + $0x148] sm:$0xff] }
  0x13   : > { %292 = vmatpush.msra.mxu1 %v222_v13  ;;  %264 = vmatpush.msra.mxu0 %v205_v12  ;;  %v219_v23 = vld [vmem:[%s730_s1 + $0xd0] sm:$0xff]  ;;  %v202_v25 = vld [vmem:[%s730_s1 + $0x48] sm:$0xff]  ;;  %v233_v28 = vld [vmem:[%s730_s1 + $0x140] sm:$0xff] }
  0x14   : > { %351 = vmatpush.msra.mxu3 %v253_v14  ;;  %323 = vmatpush.msra.mxu2 %v236_v16  ;;  %v250_v26 = vld [vmem:[%s730_s1 + $0x1c8] sm:$0xff]  ;;  %v201_v29 = vld [vmem:[%s730_s1 + $0x40] sm:$0xff]  ;;  %v232_v32 = vld [vmem:[%s730_s1 + $0x138] sm:$0xff] }
  0x15   : > { %293 = vmatpush.msra.mxu1 %v221_v15  ;;  %265 = vmatpush.msra.mxu0 %v204_v17  ;;  %v218_v27 = vld [vmem:[%s730_s1 + $0xc8] sm:$0xff]  ;;  %v249_v30 = vld [vmem:[%s730_s1 + $0x1c0] sm:$0xff]  ;;  %v200_v33 = vld [vmem:[%s730_s1 + $0x38] sm:$0xff] }
  0x16   : > { %352 = vmatpush.msra.mxu3 %v252_v18  ;;  %324 = vmatpush.msra.mxu2 %v235_v20  ;;  %v217_v31 = vld [vmem:[%s730_s1 + $0xc0] sm:$0xff]  ;;  %v248_v34 = vld [vmem:[%s730_s1 + $0x1b8] sm:$0xff]  ;;  %v231_v36 = vld [vmem:[%s730_s1 + $0x130] sm:$0xff] }
  0x17   : > { %294 = vmatpush.msra.mxu1 %v220_v19  ;;  %266 = vmatpush.msra.mxu0 %v203_v21  ;;  %v216_v35 = vld [vmem:[%s730_s1 + $0xb8] sm:$0xff]  ;;  %v199_v37 = vld [vmem:[%s730_s1 + $0x30] sm:$0xff]  ;;  %v230_v40 = vld [vmem:[%s730_s1 + $0x128] sm:$0xff] }
  0x18   : > { %353 = vmatpush.msra.mxu3 %v251_v22  ;;  %325 = vmatpush.msra.mxu2 %v234_v24  ;;  %v247_v38 = vld [vmem:[%s730_s1 + $0x1b0] sm:$0xff]  ;;  %v198_v41 = vld [vmem:[%s730_s1 + $0x28] sm:$0xff]  ;;  %v229_v44 = vld [vmem:[%s730_s1 + $0x120] sm:$0xff] }
  0x19   : > { %295 = vmatpush.msra.mxu1 %v219_v23  ;;  %267 = vmatpush.msra.mxu0 %v202_v25  ;;  %v215_v39 = vld [vmem:[%s730_s1 + $0xb0] sm:$0xff]  ;;  %v246_v42 = vld [vmem:[%s730_s1 + $0x1a8] sm:$0xff]  ;;  %v197_v45 = vld [vmem:[%s730_s1 + $0x20] sm:$0xff] }
  0x1a   : > { %354 = vmatpush.msra.mxu3 %v250_v26  ;;  %326 = vmatpush.msra.mxu2 %v233_v28  ;;  %v214_v43 = vld [vmem:[%s730_s1 + $0xa8] sm:$0xff]  ;;  %v245_v46 = vld [vmem:[%s730_s1 + $0x1a0] sm:$0xff]  ;;  %v228_v48 = vld [vmem:[%s730_s1 + $0x118] sm:$0xff] }
  0x1b   : > { %296 = vmatpush.msra.mxu1 %v218_v27  ;;  %268 = vmatpush.msra.mxu0 %v201_v29  ;;  %v213_v47 = vld [vmem:[%s730_s1 + $0xa0] sm:$0xff]  ;;  %v196_v49 = vld [vmem:[%s730_s1 + $0x18] sm:$0xff]  ;;  %v227_v52 = vld [vmem:[%s730_s1 + $0x110] sm:$0xff] }
  0x1c   : > { %355 = vmatpush.msra.mxu3 %v249_v30  ;;  %327 = vmatpush.msra.mxu2 %v232_v32  ;;  %v244_v50 = vld [vmem:[%s730_s1 + $0x198] sm:$0xff]  ;;  %v195_v53 = vld [vmem:[%s730_s1 + $0x10] sm:$0xff]  ;;  %v226_v56 = vld [vmem:[%s730_s1 + $0x108] sm:$0xff] }
  0x1d   : > { %297 = vmatpush.msra.mxu1 %v217_v31  ;;  %269 = vmatpush.msra.mxu0 %v200_v33  ;;  %v212_v51 = vld [vmem:[%s730_s1 + $0x98] sm:$0xff]  ;;  %v243_v54 = vld [vmem:[%s730_s1 + $0x190] sm:$0xff]  ;;  %v194_v57 = vld [vmem:[%s730_s1 + $0x8] sm:$0xff] }
  0x1e   : > { %356 = vmatpush.msra.mxu3 %v248_v34  ;;  %328 = vmatpush.msra.mxu2 %v231_v36  ;;  %v211_v55 = vld [vmem:[%s730_s1 + $0x90] sm:$0xff]  ;;  %v242_v58 = vld [vmem:[%s730_s1 + $0x188] sm:$0xff]  ;;  %v225_v60 = vld [vmem:[%s730_s1 + $0x100] sm:$0xff] }
  0x1f   : > { %298 = vmatpush.msra.mxu1 %v216_v35  ;;  %270 = vmatpush.msra.mxu0 %v199_v37  ;;  %v210_v59 = vld [vmem:[%s730_s1 + $0x88] sm:$0xff]  ;;  %v193_v61 = vld [vmem:[%s730_s1] sm:$0xff]  ;;  %v179_v62 = vld [vmem:[%s683_s6 + $0x10] sm:$0xff] }
  0x20   : > { %357 = vmatpush.msra.mxu3 %v247_v38  ;;  %329 = vmatpush.msra.mxu2 %v230_v40  ;;  %v241_v63 = vld [vmem:[%s730_s1 + $0x180] sm:$0xff]  ;;  %v180_v1 = vld [vmem:[%s683_s6 + $0x18] sm:$0xff]  ;;  %v178_v3 = vld [vmem:[%s683_s6 + $0x8] sm:$0xff] }
  0x21   : > { %299 = vmatpush.msra.mxu1 %v215_v39  ;;  %271 = vmatpush.msra.mxu0 %v198_v41  ;;  %v177_v0 = vld [vmem:[%s683_s6] sm:$0xff]  ;;  %v183_v4 = vld [vmem:[%s683_s6 + $0x30] sm:$0xff]  ;;  %v184_v6 = vld [vmem:[%s683_s6 + $0x38] sm:$0xff] }
  0x22   : > { %358 = vmatpush.msra.mxu3 %v246_v42  ;;  %330 = vmatpush.msra.mxu2 %v229_v44  ;;  %v209_v2 = vld [vmem:[%s730_s1 + $0x80] sm:$0xff]  ;;  %v182_v7 = vld [vmem:[%s683_s6 + $0x28] sm:$0xff]  ;;  %v187_v8 = vld [vmem:[%s683_s6 + $0x50] sm:$0xff] }
  0x23   : > { %300 = vmatpush.msra.mxu1 %v214_v43  ;;  %272 = vmatpush.msra.mxu0 %v197_v45  ;;  %v181_v5 = vld [vmem:[%s683_s6 + $0x20] sm:$0xff]  ;;  %v188_v10 = vld [vmem:[%s683_s6 + $0x58] sm:$0xff]  ;;  %v186_v11 = vld [vmem:[%s683_s6 + $0x48] sm:$0xff] }
  0x24   : > { %359 = vmatpush.msra.mxu3 %v245_v46  ;;  %331 = vmatpush.msra.mxu2 %v228_v48  ;;  %v185_v9 = vld [vmem:[%s683_s6 + $0x40] sm:$0xff]  ;;  %v191_v12 = vld [vmem:[%s683_s6 + $0x70] sm:$0xff]  ;;  %v192_v14 = vld [vmem:[%s683_s6 + $0x78] sm:$0xff] }
  0x25   : > { %301 = vmatpush.msra.mxu1 %v213_v47  ;;  %273 = vmatpush.msra.mxu0 %v196_v49  ;;  %v189_v13 = vld [vmem:[%s683_s6 + $0x60] sm:$0xff]  ;;  %v190_v15 = vld [vmem:[%s683_s6 + $0x68] sm:$0xff] }
  0x26   : > { %360 = vmatpush.msra.mxu3 %v244_v50  ;;  %332 = vmatpush.msra.mxu2 %v227_v52  ;;  %v458_v16 = vld [vmem:[%s731_s2] ss:$0 sm:$0xff] }
  0x27   : > { %302 = vmatpush.msra.mxu1 %v212_v51  ;;  %274 = vmatpush.msra.mxu0 %v195_v53 }
  0x28   : > { %361 = vmatpush.msra.mxu3 %v243_v54  ;;  %333 = vmatpush.msra.mxu2 %v226_v56 }
  0x29   : > { %303 = vmatpush.msra.mxu1 %v211_v55  ;;  %275 = vmatpush.msra.mxu0 %v194_v57 }
  0x2a   : > { %362 = vmatpush.msra.mxu3 %v242_v58  ;;  %334 = vmatpush.msra.mxu2 %v225_v60 }
  0x2b   : > { %304 = vmatpush.msra.mxu1 %v210_v59  ;;  %276 = vmatpush.msra.mxu0 %v193_v61 }
  0x2c   : > { %335 = vmatmul.f32.vlgmr.msra.gmra.mxu2 %v179_v62  ;;  %363 = vmatpush.msra.mxu3 %v241_v63 }
  0x2d   : > { %277 = vmatmul.f32.vlgmr.msra.gmra.mxu0 %v177_v0  ;;  %364 = vmatmul.f32.vlgmr.msra.gmra.mxu3 %v180_v1 }
  0x2e   : > { %305 = vmatpush.msra.mxu1 %v209_v2 }
  0x2f   : > { %306 = vmatmul.f32.vlgmr.msra.gmra.mxu1 %v178_v3 }
  0x34   : > { %338 = vmatmul.f32.gmra.mxu2 %v183_v4 }
  0x35   : > { %280 = vmatmul.f32.gmra.mxu0 %v181_v5  ;;  %367 = vmatmul.f32.gmra.mxu3 %v184_v6 }
  0x37   : > { %309 = vmatmul.f32.gmra.mxu1 %v182_v7 }
  0x3c   : > { %341 = vmatmul.f32.gmra.mxu2 %v187_v8 }
  0x3d   : > { %283 = vmatmul.f32.gmra.mxu0 %v185_v9  ;;  %370 = vmatmul.f32.gmra.mxu3 %v188_v10 }
  0x3f   : > { %312 = vmatmul.f32.gmra.mxu1 %v186_v11 }
  0x44   : > { %344 = vmatmul.f32.gmra.mxu2 %v191_v12 }
  0x45   : > { %286 = vmatmul.f32.gmra.mxu0 %v189_v13  ;;  %373 = vmatmul.f32.gmra.mxu3 %v192_v14 }
  0x47   : > { %315 = vmatmul.f32.gmra.mxu1 %v190_v15 }
  0xaa   : > { %v278_v17 = vpop.f32.mrf.mxu0 }
  0xab   : > { %v279_v18 = vadd.f32 %v458_v16, %v278_v17 }
  0xac   : > { %v307_v19 = vpop.f32.mrf.mxu1 }
  0xad   : > { %v308_v20 = vadd.f32 %v307_v19, %v279_v18 }
  0xaf   : > { %v336_v21 = vpop.f32.mrf.mxu2 }
  0xb0   : > { %v337_v22 = vadd.f32 %v336_v21, %v308_v20  ;;  %v365_v23 = vpop.f32.mrf.mxu3 }
  0xb2   : > { %v366_v24 = vadd.f32 %v365_v23, %v337_v22  ;;  %v281_v25 = vpop.f32.mrf.mxu0 }
  0xb3   : > { %v282_v26 = vadd.f32 %v458_v16, %v281_v25 }
  0xb4   : > { %377 = vst [vmem:[%s175_s27] sm:$0xff] %v366_v24  ;;  %v310_v27 = vpop.f32.mrf.mxu1 }
  0xb5   : > { %v311_v28 = vadd.f32 %v310_v27, %v282_v26 }
  0xb7   : > { %v339_v29 = vpop.f32.mrf.mxu2 }
  0xb8   : > { %v340_v30 = vadd.f32 %v339_v29, %v311_v28  ;;  %v368_v31 = vpop.f32.mrf.mxu3 }
  0xba   : > { %v369_v32 = vadd.f32 %v368_v31, %v340_v30  ;;  %v284_v33 = vpop.f32.mrf.mxu0 }
  0xbb   : > { %v285_v34 = vadd.f32 %v458_v16, %v284_v33 }
  0xbc   : > { %378 = vst [vmem:[%s175_s27 + $0x8] sm:$0xff] %v369_v32  ;;  %v313_v35 = vpop.f32.mrf.mxu1 }
  0xbd   : > { %v314_v36 = vadd.f32 %v313_v35, %v285_v34 }
  0xbf   : > { %v342_v37 = vpop.f32.mrf.mxu2 }
  0xc0   : > { %v343_v38 = vadd.f32 %v342_v37, %v314_v36  ;;  %v371_v39 = vpop.f32.mrf.mxu3 }
  0xc2   : > { %v372_v40 = vadd.f32 %v371_v39, %v343_v38  ;;  %v287_v41 = vpop.f32.mrf.mxu0 }
  0xc3   : > { %v288_v42 = vadd.f32 %v458_v16, %v287_v41 }
  0xc4   : > { %379 = vst [vmem:[%s175_s27 + $0x10] sm:$0xff] %v372_v40  ;;  %v316_v43 = vpop.f32.mrf.mxu1 }
  0xc5   : > { %v317_v44 = vadd.f32 %v316_v43, %v288_v42 }
  0xc7   : > { %v345_v45 = vpop.f32.mrf.mxu2 }
  0xc8   : > { %v346_v46 = vadd.f32 %v345_v45, %v317_v44  ;;  %v374_v47 = vpop.f32.mrf.mxu3 }
  0xca   : > { %v375_v48 = vadd.f32 %v374_v47, %v346_v46 }
  0xcc   : > { %380 = vst [vmem:[%s175_s27 + $0x18] sm:$0xff] %v375_v48 }
  0xcd PF: > { %s13_s12 = sadd.s32 1, %s465_s12  }
  0xce   : > { %p10_p4 = scmp.ge.s32.totalorder %s13_s12, 4  }
  0xd0   :  { %12 = sbr.rel (!%p10_p4) target bundleno = 1 (0x1), region = 62 }

</bundles_post_ra>
